<compile_context>
chip_gen: v6e
topology: v6e:2x2x1
jax: 0.10.0
libtpu: 0.0.40
codegen_flags: <defaults>
</compile_context>

<pallas_src>
import math

import jax
import jax.numpy as jnp
from jax import lax
from jax.experimental import pallas as pl
from jax.experimental.pallas import tpu as pltpu
import numpy as np


# --------------------------------------------------------------------------- #
# Pallas kernel: one grid step = a chunk of frames.
#   patches_ref : (tile_bt, Np, K)      im2col patches for tile_bt frames
#   w_ref       : (K, D)                flattened Conv2d weight
#   t_ref       : (tile_bt, 1, D)       (temporal-embedding row + conv bias) per frame
#   o_ref       : (tile_bt, Np, D)
# --------------------------------------------------------------------------- #
def _data_embed_kernel(patches_ref, w_ref, t_ref, o_ref):
    tb, n_patch, k = patches_ref.shape
    d = w_ref.shape[1]
    # Flatten frames into the sublane axis (tile-aligned: Np % 8 == 0 whenever tb > 1).
    a = patches_ref[...].reshape(tb * n_patch, k)
    acc = jnp.dot(
        a,
        w_ref[...],
        preferred_element_type=jnp.float32,
        precision=lax.Precision.HIGHEST,
    )
    acc = acc.reshape(tb, n_patch, d) + t_ref[...]
    o_ref[...] = acc.astype(o_ref.dtype)


# --------------------------------------------------------------------------- #
# Fixed (sinusoidal, non-trainable) temporal embedding tables — Informer-style
# TemporalEmbedding(embed_type='fixed').  Tiny gather work; done in the wrapper.
# --------------------------------------------------------------------------- #
def _fixed_embedding_table(c_in, d_model):
    position = np.arange(c_in, dtype=np.float32)[:, None]
    div_term = np.exp(
        np.arange(0, d_model, 2, dtype=np.float32) * -(math.log(10000.0) / d_model)
    )
    table = np.zeros((c_in, d_model), dtype=np.float32)
    table[:, 0::2] = np.sin(position * div_term)
    table[:, 1::2] = np.cos(position * div_term)
    return jnp.asarray(table)


def _temporal_embedding_fixed(x_mark, d_model, freq="h"):
    """TemporalEmbedding(d_model, 'fixed', freq): sum of FixedEmbedding lookups -> (B, T, D)."""
    xm = x_mark.astype(jnp.int32)
    out = (
        jnp.take(_fixed_embedding_table(13, d_model), xm[..., 0], axis=0)   # month
        + jnp.take(_fixed_embedding_table(32, d_model), xm[..., 1], axis=0)  # day
        + jnp.take(_fixed_embedding_table(7, d_model), xm[..., 2], axis=0)   # weekday
        + jnp.take(_fixed_embedding_table(24, d_model), xm[..., 3], axis=0)  # hour
    )
    if freq == "t":
        out = out + jnp.take(_fixed_embedding_table(4, d_model), xm[..., 4], axis=0)
    return out


# --------------------------------------------------------------------------- #
# Wrapper: DataEmbedding_wo_pos.forward(x, x_mark)
# --------------------------------------------------------------------------- #
def data_embedding_wo_pos(
    x,
    x_mark,
    conv_weight,   # (d_model, in_chans, P, P)  -- PyTorch Conv2d layout
    conv_bias,     # (d_model,)
    *,
    patch_size,
    d_model,
    freq="h",
    vmem_budget_bytes=16 << 20,   # per-step working set (double-buffered) budget
):
    B, T, H, W, C = x.shape
    P = patch_size
    assert H % P == 0 and W % P == 0, "img_size must be divisible by patch_size"
    Hp, Wp = H // P, W // P
    n_patch = Hp * Wp
    K = P * P * C
    BT = B * T

    # im2col patch extraction (layout plumbing, not compute).
    patches = x.reshape(BT, Hp, P, Wp, P, C)
    patches = patches.transpose(0, 1, 3, 2, 4, 5).reshape(BT, n_patch, K)
    patches = patches.astype(jnp.float32)

    # Conv2d weight (D, C, P, P) -> (P*P*C, D), matching the (i, j, c) patch order.
    w_flat = jnp.transpose(conv_weight, (2, 3, 1, 0)).reshape(K, d_model).astype(jnp.float32)
    bias = conv_bias.reshape(1, 1, d_model).astype(jnp.float32)

    # Per-frame additive term = conv bias (+ temporal embedding row, if any).
    if x_mark is None:
        temporal = jnp.broadcast_to(bias, (BT, 1, d_model)).astype(jnp.float32)
    else:
        temporal = _temporal_embedding_fixed(x_mark, d_model, freq=freq)
        temporal = temporal.reshape(BT, 1, d_model).astype(jnp.float32) + bias

    # ---- tiling: chunk whole frames per grid step ---------------------------
    # Pick the largest frame-chunk that fits the (double-buffered) VMEM budget.
    bytes_per_frame = 4 * (n_patch * K + n_patch * d_model + d_model)
    weight_bytes = 4 * K * d_model
    cap = max(1, (vmem_budget_bytes - 2 * weight_bytes) // (2 * bytes_per_frame))
    if n_patch % 8 != 0:
        cap = 1  # keep the in-kernel frame flatten a free (sublane-aligned) merge
    tile_bt = int(min(BT, cap))
    # Keep >= 2 grid steps when possible so both v7x TensorCores get work.
    if BT >= 2:
        tile_bt = min(tile_bt, max(1, BT // 2))
    # Avoid partial boundary blocks: make tile_bt a divisor of BT.
    while BT % tile_bt != 0:
        tile_bt -= 1

    grid = (BT // tile_bt,)

    out = pl.pallas_call(
        _data_embed_kernel,
        out_shape=jax.ShapeDtypeStruct((BT, n_patch, d_model), jnp.float32),
        grid_spec=pltpu.PrefetchScalarGridSpec(
            num_scalar_prefetch=0,
            grid=grid,
            in_specs=[
                pl.BlockSpec((tile_bt, n_patch, K), lambda i: (i, 0, 0)),
                pl.BlockSpec((K, d_model), lambda i: (0, 0)),
                pl.BlockSpec((tile_bt, 1, d_model), lambda i: (i, 0, 0)),
            ],
            out_specs=pl.BlockSpec((tile_bt, n_patch, d_model), lambda i: (i, 0, 0)),
        ),
        compiler_params=pltpu.CompilerParams(
            dimension_semantics=("parallel",),
            vmem_limit_bytes=32 * 1024 * 1024,
        ),
    )(patches, w_flat, temporal)

    # TODO(synk): nn.Dropout(p=0.1) is treated as eval-mode identity (no RNG mask).
    return out.reshape(B, T, Hp, Wp, d_model)


# --------------------------------------------------------------------------- #
# Pure-numpy (float64) reference of the PyTorch forward.
# --------------------------------------------------------------------------- #
def _reference_forward(x, x_mark, weight, bias, patch_size, d_model, freq="h"):
    x = np.asarray(x, np.float64)
    w = np.asarray(weight, np.float64)
    b = np.asarray(bias, np.float64)
    B, T, H, W, C = x.shape
    P = patch_size
    Hp, Wp = H // P, W // P
    D = d_model
    out = np.zeros((B, T, Hp, Wp, D), np.float64)
    for bi in range(B):
        for ti in range(T):
            for hp in range(Hp):
                for wp in range(Wp):
                    patch = x[bi, ti, hp * P:(hp + 1) * P, wp * P:(wp + 1) * P, :]  # (P,P,C)
                    out[bi, ti, hp, wp, :] = np.einsum("ijc,dcij->d", patch, w) + b
    if x_mark is not None:
        xm = np.asarray(x_mark, np.int64)

        def table(c_in):
            pos = np.arange(c_in, dtype=np.float64)[:, None]
            div = np.exp(np.arange(0, D, 2, dtype=np.float64) * -(math.log(10000.0) / D))
            t = np.zeros((c_in, D), np.float64)
            t[:, 0::2] = np.sin(pos * div)
            t[:, 1::2] = np.cos(pos * div)
            return t

        temp = (
            table(13)[xm[..., 0]]
            + table(32)[xm[..., 1]]
            + table(7)[xm[..., 2]]
            + table(24)[xm[..., 3]]
        )
        if freq == "t":
            temp = temp + table(4)[xm[..., 4]]
        out = out + temp[:, :, None, None, :]
    return out


if __name__ == "__main__":
    B, T = 2, 4
    img_size = (16, 16)
    patch_size = 4
    in_chans = 3
    d_model = 128  # lane-dense output (multiple of 128)

    key = jax.random.PRNGKey(0)
    k_x, k_w, k_b, k_m = jax.random.split(key, 4)

    x = jax.random.normal(k_x, (B, T, img_size[0], img_size[1], in_chans), jnp.float32)

    # Conv2d parameters, PyTorch layout (out_ch, in_ch, kH, kW) with Kaiming-uniform-ish init.
    fan_in = in_chans * patch_size * patch_size
    bound = 1.0 / math.sqrt(fan_in)
    conv_w = jax.random.uniform(
        k_w, (d_model, in_chans, patch_size, patch_size), jnp.float32, -bound, bound
    )
    conv_b = jax.random.uniform(k_b, (d_model,), jnp.float32, -bound, bound)

    # x_mark: (B, T, 4) integer marks [month, day, weekday, hour] for freq='h'.
    x_mark = jnp.stack(
        [
            jax.random.randint(k_m, (B, T), 0, 13),
            jax.random.randint(jax.random.fold_in(k_m, 1), (B, T), 0, 32),
            jax.random.randint(jax.random.fold_in(k_m, 2), (B, T), 0, 7),
            jax.random.randint(jax.random.fold_in(k_m, 3), (B, T), 0, 24),
        ],
        axis=-1,
    )

    # Path with temporal marks.
    out = data_embedding_wo_pos(x, x_mark, conv_w, conv_b,
                                patch_size=patch_size, d_model=d_model)
    out = jax.block_until_ready(out)
    ref = _reference_forward(x, x_mark, conv_w, conv_b, patch_size, d_model)
    assert out.shape == ref.shape, (out.shape, ref.shape)
    np.testing.assert_allclose(np.asarray(out, np.float64), ref, rtol=2e-3, atol=2e-3)

    # Path with x_mark=None.
    out2 = data_embedding_wo_pos(x, None, conv_w, conv_b,
                                 patch_size=patch_size, d_model=d_model)
    out2 = jax.block_until_ready(out2)
    ref2 = _reference_forward(x, None, conv_w, conv_b, patch_size, d_model)
    np.testing.assert_allclose(np.asarray(out2, np.float64), ref2, rtol=2e-3, atol=2e-3)

    print("KERNEL_OK")
</pallas_src>

<mosaic_0001>
module attributes {stable_mosaic.version = 11 : i64} {
  func.func @_data_embed_kernel(%arg0: i32, %arg1: memref<4x16x48xf32, #tpu.memory_space<vmem>>, %arg2: memref<48x128xf32, #tpu.memory_space<vmem>>, %arg3: memref<4x1x128xf32, #tpu.memory_space<vmem>>, %arg4: memref<4x16x128xf32, #tpu.memory_space<vmem>>) attributes {dimension_semantics = [#tpu.dimension_semantics<parallel>], iteration_bounds = array<i64: 2>, scalar_prefetch = 0 : i64, scratch_operands = 0 : i64, tpu.core_type = #tpu.core_type<tc>, window_params = [{transform_indices = @transform_0, window_bounds = array<i64: 4, 16, 48>}, {pipeline_mode = #tpu.pipeline_mode<synchronous>, transform_indices = @transform_1, window_bounds = array<i64: 48, 128>}, {transform_indices = @transform_2, window_bounds = array<i64: 4, 1, 128>}, {transform_indices = @transform_3, window_bounds = array<i64: 4, 16, 128>}]} {
    %c0 = arith.constant 0 : index
    %c0_0 = arith.constant 0 : index
    %c0_1 = arith.constant 0 : index
    %0 = vector.load %arg1[%c0, %c0_0, %c0_1] : memref<4x16x48xf32, #tpu.memory_space<vmem>>, vector<4x16x48xf32>
    %1 = vector.shape_cast %0 : vector<4x16x48xf32> to vector<64x48xf32>
    %c0_2 = arith.constant 0 : index
    %c0_3 = arith.constant 0 : index
    %2 = vector.load %arg2[%c0_2, %c0_3] : memref<48x128xf32, #tpu.memory_space<vmem>>, vector<48x128xf32>
    %cst = arith.constant dense<0.000000e+00> : vector<64x128xf32>
    %3 = tpu.matmul %1, %2, %cst {dimension_numbers = #tpu.dot_dimension_numbers<[1], [0], [0], [1], [0, 0, 1, 1], [], []>, precision = #tpu.contract_precision<fp32>} : vector<64x48xf32>, vector<48x128xf32>, vector<64x128xf32> -> vector<64x128xf32>
    %4 = vector.shape_cast %3 : vector<64x128xf32> to vector<4x16x128xf32>
    %c0_4 = arith.constant 0 : index
    %c0_5 = arith.constant 0 : index
    %c0_6 = arith.constant 0 : index
    %5 = vector.load %arg3[%c0_4, %c0_5, %c0_6] : memref<4x1x128xf32, #tpu.memory_space<vmem>>, vector<4x1x128xf32>
    %6 = vector.broadcast %5 : vector<4x1x128xf32> to vector<4x16x128xf32>
    %7 = arith.addf %4, %6 : vector<4x16x128xf32>
    %c0_7 = arith.constant 0 : index
    %c0_8 = arith.constant 0 : index
    %c0_9 = arith.constant 0 : index
    %8 = vector.load %arg4[%c0_7, %c0_8, %c0_9] : memref<4x16x128xf32, #tpu.memory_space<vmem>>, vector<4x16x128xf32>
    tpu.vector_store %arg4[%c0_7, %c0_8, %c0_9], %7 {strides = array<i32>} : memref<4x16x128xf32, #tpu.memory_space<vmem>>, vector<4x16x128xf32>,
    return
  }
  func.func @transform_0(%arg0: i32) -> (i32, i32, i32) {
    %c0_i32 = arith.constant 0 : i32
    %c0_i32_0 = arith.constant 0 : i32
    %c0_i32_1 = arith.constant 0 : i32
    return %arg0, %c0_i32, %c0_i32_0 : i32, i32, i32
  }
  func.func @transform_1(%arg0: i32) -> (i32, i32) {
    %c0_i32 = arith.constant 0 : i32
    %c0_i32_0 = arith.constant 0 : i32
    %c0_i32_1 = arith.constant 0 : i32
    return %c0_i32, %c0_i32_0 : i32, i32
  }
  func.func @transform_2(%arg0: i32) -> (i32, i32, i32) {
    %c0_i32 = arith.constant 0 : i32
    %c0_i32_0 = arith.constant 0 : i32
    %c0_i32_1 = arith.constant 0 : i32
    return %arg0, %c0_i32, %c0_i32_0 : i32, i32, i32
  }
  func.func @transform_3(%arg0: i32) -> (i32, i32, i32) {
    %c0_i32 = arith.constant 0 : i32
    %c0_i32_0 = arith.constant 0 : i32
    %c0_i32_1 = arith.constant 0 : i32
    return %arg0, %c0_i32, %c0_i32_0 : i32, i32, i32
  }
}

</mosaic_0001>

<bundles_post_ra>
// kernel: tpu_custom_call.1
= control target key start
LH: loop header
LB: loop body
LE: loop exit
PB: predicated region body
PF: predicated region fallthrough
CT: control target
= control target key end

     0   :  { %8 = vsyncpa [#allocation3], 0  ;;  %s2290_s0 = inlined_call_operand.hbm [shape: f32[8,16,48], index: 0, kind: input, shape index: {}]   ;;  %s2291_s1 = inlined_call_operand.hbm [shape: f32[48,128], index: 1, kind: input, shape index: {}]   ;;  %s2292_s2 = inlined_call_operand.hbm [shape: f32[8,1,128], index: 2, kind: input, shape index: {}]   ;;  %s2293_s3 = inlined_call_operand.hbm [shape: f32[8,16,128], index: 3, kind: output, shape index: {}]  }
   0x1   :  { %10 = vsyncpa [#allocation3 + $0x1], 0 }
   0x2   :  { %11 = vsyncpa [#allocation6], 0 }
   0x3   :  { %12 = vsyncpa [#allocation4], 0 }
   0x4   :  { %14 = vsyncpa [#allocation4 + $0x1], 0  ;;  %s1771_s12 = smov 0   ;;  %s1773_s13 = smov 0  }
   0x5   :  { %s1775_s14 = smov 0   ;;  %s1777_s15 = smov 0  }
   0x6 LB: > { %s1792_s16 = sadd.s32 1, %s1739_s15   ;;  %s27_s17 = sadd.s32 1, %s1735_s14  ;;  %s1739_s15 = sphi %s1777_s15, %s2314_s15   ;;  %s1735_s14 = sphi %s1775_s14, %s2313_s14   ;;  %s1731_s13 = sphi %s1773_s13, %s2312_s13   ;;  %s1727_s12 = sphi %s1771_s12, %s2311_s12  }
   0x7   : > { %s24_s18 = ssub.s32 %s1739_s15, %s1792_s16  ;;  %p34_p0 = scmp.ne.s32.totalorder %s1735_s14, %s1731_s13 }
   0x8   : > { %p25_p1 = scmp.eq.s32.totalorder %s24_s18, 0  ;;  %p35_p2 = scmp.eq.s32.totalorder %s1739_s15, 0 }
   0x9   : > { %p1543_p5 = scmp.lt.s32.totalorder %s1739_s15, 2  ;;  %s150_s20 = sand.u32 1, %s1739_s15  }
   0xa   : > { %s1801_s19 = scalar_select %p25_p1, %s1735_s14, %s27_s17  }
   0xb   : > { %p36_p3 = por %p35_p2, %p34_p0  ;;  %s152_s21 = sand.u32 1, %s1735_s14  }
   0xc   : > { %s1262_s22 = sshll.u32 %s152_s21, 6  ;;  %s1285_s23 = sshll.u32 %s1739_s15, 10 }
   0xd   : > { %s1814_s26 = scalar_lea.hbm %s2290_s0, %s1285_s23  ;;  %s154_s27 = scalar_lea.vmem [#allocation2], %s1262_s22 }
   0xe   : > { %s162_s28 = sshll.u32 %s154_s27, 4  ;;  %p1816_p6 = pnand %p1543_p5, %p36_p3  ;;  %s1820_s28 = int_to_ptr.vmem [resolvable:$true] %s162_s28 }
   0xf   : > { %s1822_s30 = sshll.u32 %s152_s21, 2  ;;  %s1824_s4 = scalar_lea.sflag [#allocation3], %s150_s20 }
  0x10   : > { %s1585_s5 = scalar_lea.hbm %s1814_s26, 1024  ;;  %p1587_p8 = pneg %p1816_p6 }
  0x11   : > { %p1586_p7 = scmp.ne.s32.totalorder %s1814_s26, %s1585_s5  ;;  %s1590_s8 = scalar_lea.hbm %s2290_s0, 2048 }
  0x12   : > { %p1591_p11 = scmp.lt.s32.totalorder %s1814_s26, %s2290_s0  ;;  %p1592_p12 = scmp.lt.s32.totalorder %s1590_s8, %s1585_s5 }
  0x13   : > { %p1588_p9 = pnand %p1587_p8, %p1586_p7 }
  0x14   : > { %p1593_p13 = por %p1592_p12, %p1591_p11 }
  0x15   : > { %p1589_p10 = pneg %p1588_p9 }
  0x17   : > { %p1594_p1 = pnand %p1593_p13, %p1589_p10 }
  0x19   : > { %1597 = shalt.err (!%p1594_p1)
}
  0x1a   : > { %s1598_s11 = scalar_lea.vmem %s1820_s28, 1024  ;;  %s1741_s17 = smov [#allocation2]  }
  0x1b   : > { %p1599_p2 = scmp.ne.s32.totalorder %s1820_s28, %s1598_s11  ;;  %s1603_s18 = sshll.u32 %s1741_s17, 4  ;;  %s1604_s18 = int_to_ptr.vmem [resolvable:$false] %s1603_s18 }
  0x1c   : > { %s1605_s20 = scalar_lea.vmem %s1604_s18, 2048  ;;  %p1606_p7 = scmp.lt.s32.totalorder %s1820_s28, %s1604_s18 }
  0x1d   : > { %p1601_p3 = pnand %p1599_p2, %p1587_p8  ;;  %p1607_p9 = scmp.lt.s32.totalorder %s1605_s20, %s1598_s11 }
  0x1f   : > { %p1602_p5 = pneg %p1601_p3  ;;  %p1608_p4 = por %p1607_p9, %p1606_p7 }
  0x21   : > { %p1609_p11 = pnand %p1608_p4, %p1602_p5 }
  0x23   : > { %1612 = shalt.err (!%p1609_p11)
}
  0x24   : > { %s1742_s21 = smov 128   ;;  %s1743_s22 = smov 8  }
  0x25   : > { %1534 = dma.hbm_to_vmem [thread:$0]  (!%p1816_p6), %s1814_s26, 1024, %s1820_s28, %s1824_s4, %s1742_s21, %s1742_s21, %s1743_s22  }
  0x26   : > { %s176_s23 = scalar_lea.vmem [#allocation7], %s1822_s30  ;;  %s1856_s25 = sadd.s32 4294967295, %s1739_s15  }
  0x27   : > { %s183_s24 = sshll.u32 %s176_s23, 4  ;;  %s1258_s27 = sadd.s32 4294967294, %s1739_s15   ;;  %s1896_s24 = int_to_ptr.vmem [resolvable:$true] %s183_s24 }
  0x28   : > { %p40_p4 = scmp.ne.s32.totalorder %s1731_s13, %s1727_s12  ;;  %p2294_p10 = scmp.eq.s32.totalorder %s1856_s25, 0 }
  0x29   : > { %p111_p12 = scmp.eq.s32.totalorder %s1856_s25, 1  ;;  %p117_p13 = scmp.eq.s32.totalorder %s1258_s27, 1 }
  0x2a   : > { %p1259_p1 = scmp.ge.s32.totalorder %s1739_s15, 1  ;;  %p1866_p2 = por %p2294_p10, %p40_p4 }
  0x2b   : > { %p1873_p3 = por %p111_p12, %p34_p0  ;;  %p1877_p5 = por %p117_p13, %p40_p4 }
  0x2c   : > { %s2299_s5 = scalar_select %p1866_p2, 1, 0 }
  0x2d   : > { %s2300_s26 = scalar_select %p1873_p3, 1, 0 }
  0x2e   : > { %s2301_s28 = scalar_select %p1877_p5, 1, 0 }
  0x2f   : > { %p124_p7 = scmp.lt.s32.totalorder %s1739_s15, 3  ;;  %s1744_s6 = smov [#allocation5]  }
  0x30   : > { %s136_s7 = sshll.u32 %s1744_s6, 4  ;;  %s1286_s8 = sshll.u32 %s1739_s15, 6  ;;  %s1886_s7 = int_to_ptr.vmem [resolvable:$true] %s136_s7 }
  0x31   : > { %p1882_p9 = pnand %p1259_p1, %p124_p7  ;;  %s1894_s11 = scalar_lea.hbm %s2292_s2, %s1286_s8 }
  0x32   : > { %s1613_s18 = scalar_lea.hbm %s1894_s11, 64  ;;  %s1618_s27 = scalar_lea.hbm %s2292_s2, 128 }
  0x33   : > { %s2302_s30 = scalar_select %p1882_p9, 1, 0 }
  0x34   : > { %p1527_p0 = pneg %p1882_p9  ;;  %p1614_p4 = scmp.ne.s32.totalorder %s1894_s11, %s1613_s18 }
  0x35   : > { %p1619_p1 = scmp.lt.s32.totalorder %s1894_s11, %s2292_s2  ;;  %p1620_p7 = scmp.lt.s32.totalorder %s1618_s27, %s1613_s18 }
  0x36   : > { %p1900_p11 = pnand %p1527_p0, %p2294_p10  ;;  %p1616_p12 = pnand %p1614_p4, %p1587_p8 }
  0x37   : > { %p1621_p5 = por %p1620_p7, %p1619_p1 }
  0x38   : > { %p1617_p13 = pneg %p1616_p12 }
  0x3a   : > { %p1622_p0 = pnand %p1621_p5, %p1617_p13 }
  0x3c   : > { %1625 = shalt.err (!%p1622_p0)
}
  0x3d   : > { %s1626_s9 = scalar_lea.vmem %s1896_s24, 64  ;;  %s1745_s10 = smov [#allocation7]  }
  0x3e   : > { %p1627_p10 = scmp.ne.s32.totalorder %s1896_s24, %s1626_s9  ;;  %s1631_s20 = sshll.u32 %s1745_s10, 4  ;;  %s1632_s20 = int_to_ptr.vmem [resolvable:$false] %s1631_s20 }
  0x3f   : > { %s1633_s23 = scalar_lea.vmem %s1632_s20, 128  ;;  %p1634_p3 = scmp.lt.s32.totalorder %s1896_s24, %s1632_s20 }
  0x40   : > { %p1629_p4 = pnand %p1627_p10, %p1587_p8  ;;  %p1635_p2 = scmp.lt.s32.totalorder %s1633_s23, %s1626_s9 }
  0x42   : > { %p1630_p12 = pneg %p1629_p4  ;;  %p1636_p9 = por %p1635_p2, %p1634_p3 }
  0x44   : > { %p1637_p1 = pnand %p1636_p9, %p1630_p12 }
  0x46   : > { %1640 = shalt.err (!%p1637_p1)
}
  0x47   : > { %s1746_s18 = smov 16   ;;  %s1747_s27 = smov 1  }
  0x48   : > { %1537 = dma.hbm_to_vmem [thread:$0]  (!%p1816_p6), %s1894_s11, 64, %s1896_s24, %s1824_s4, %s1746_s18, %s1746_s18, %s1747_s27  }
  0x49   : > { %p1643_p8 = pneg %p1900_p11  ;;  %s1652_s6 = scalar_lea.vmem %s1886_s7, 768 }
  0x4a   : > { %p1653_p10 = scmp.ne.s32.totalorder %s1886_s7, %s1652_s6  ;;  %p1660_p3 = scmp.lt.s32.totalorder %s1886_s7, %s1886_s7 }
  0x4b   : > { %p1661_p9 = scmp.lt.s32.totalorder %s1652_s6, %s1652_s6 }
  0x4c   : > { %p1655_p5 = pnand %p1653_p10, %p1643_p8 }
  0x4d   : > { %p1662_p13 = por %p1661_p9, %p1660_p3 }
  0x4e   : > { %p1656_p2 = pneg %p1655_p5 }
  0x50   : > { %p1663_p7 = pnand %p1662_p13, %p1656_p2 }
  0x52   : > { %1666 = shalt.err (!%p1663_p7)
}
  0x53   : > { %1530 = dma.hbm_to_vmem [thread:$0]  (!%p1900_p11), %s2291_s1, 768, %s1886_s7, [#allocation6], %s1742_s21, %s1742_s21, %s1743_s22  }
  0x54   : > { %p2304_p6 = scmp.ne.s32.totalorder %s2302_s30, 0 }
  0x55   : > { %s197_s24 = sand.u32 (!%p2304_p6), 1, %s1856_s25   ;;  %s1946_s11 = sand.u32 (!%p2304_p6), 1, %s1731_s13  }
  0x56   : > { %195 = sbr.rel (%p2304_p6) target bundleno = 386 (0x182), region = 32  ;;  %s1270_s17 = sshll.u32 (!%p2304_p6), %s1946_s11, 6 }
  0x57   : > { %s198_s8 = scalar_lea.sflag (!%p2304_p6), [#allocation3], %s197_s24  ;;  %s1951_s9 = scalar_lea.vmem (!%p2304_p6), [#allocation2], %s1270_s17 }
  0x58   : > { %p2305_p0 = scmp.ne.s32.totalorder (!%p2304_p6), %s2299_s5, 0 }
  0x5b   : > { %1710 = dma.done.wait (%p2305_p0), %s198_s8, 1024  }
  0x5c   : > { %1712 = vsyncadd (%p2305_p0), %s198_s8, 4294966272  ;;  %p2306_p11 = scmp.eq.s32.totalorder %s1856_s25, 0 }
  0x5e   : > { %1714 = dma.done.wait (%p2306_p11), [#allocation6], 768   ;;  %p2307_p4 = pmov %p2306_p11 }
  0x5f   : > { %s1272_s21 = sshll.u32 %s1946_s11, 2 }
  0x60   : > { %1716 = vsyncadd (%p2307_p4), [#allocation6], 4294966528  ;;  %s1962_s22 = scalar_lea.vmem [#allocation7], %s1272_s21 }
  0x61   : > { %1718 = dma.done.wait (%p2305_p0), %s198_s8, 64  }
  0x62   : > { %1720 = vsyncadd (%p2305_p0), %s198_s8, 4294967232  ;;  %v258_v0 = vld [vmem:[#allocation5 + $0x28] sm:$0xff]  ;;  %v257_v1 = vld [vmem:[#allocation5 + $0x20] sm:$0xff]  ;;  %vm259_vm0 = vcmask 392192   ;;  %s2228_s5 = scalar_lea.vmem [#allocation8], %s1270_s17  ;;  %s1288_s7 = sshll.u32 %s1856_s25, 10 }
  0x63   : > { %v256_v2 = vld [vmem:[#allocation5 + $0x18] sm:$0xff]  ;;  %v1968_v3 = vand.u32 4294901760, %v258_v0  ;;  %v1970_v4 = vand.u32 4294901760, %v257_v1  ;;  %v255_v6 = vld [vmem:[#allocation5 + $0x10] sm:$0xff]  ;;  %v254_v7 = vld [vmem:[#allocation5 + $0x8] sm:$0xff]  ;;  %s1155_s30 = sshll.u32 %s2228_s5, 4  ;;  %s2245_s23 = scalar_lea.hbm %s2293_s3, %s1288_s7  ;;  %s2239_s30 = int_to_ptr.vmem [resolvable:$true] %s1155_s30 }
  0x64   : > { %v1972_v5 = vand.u32 4294901760, %v256_v2  ;;  %v253_v8 = vld [vmem:[#allocation5] sm:$0xff]  ;;  %v1974_v9 = vand.u32 4294901760, %v255_v6  ;;  %v1976_v10 = vand.u32 4294901760, %v254_v7  ;;  %v246_v13 = vld [vmem:[%s1951_s9 + $0x8] sm:$0xff]  ;;  %v247_v14 = vld [vmem:[%s1951_s9 + $0x10] sm:$0xff] }
  0x65   : > { %v1978_v11 = vand.u32 4294901760, %v253_v8  ;;  %v245_v12 = vld [vmem:[%s1951_s9] sm:$0xff]  ;;  %1373 = vmatprep.subr.mxu0 %v1968_v3  ;;  %v1985_v15 = vsub.f32 %v258_v0, %v1968_v3  ;;  %v1988_v16 = vsub.f32 %v257_v1, %v1970_v4  ;;  %v264_v18 = vsel %vm259_vm0, %v246_v13, 0  ;;  %v248_v19 = vld [vmem:[%s1951_s9 + $0x18] sm:$0xff]  ;;  %v250_v45 = vld [vmem:[%s1951_s9 + $0x28] sm:$0xff]  ;;  %s1141_s18 = scalar_lea.sflag [#allocation4], %s1946_s11 }
  0x66   : > { %v261_v17 = vsel %vm259_vm0, %v245_v12, 0  ;;  %1374 = vmatpush3.msra.mxu0 %v1968_v3  ;;  %v1996_v21 = vand.u32 4294901760, %v264_v18  ;;  %v1999_v22 = vsub.f32 %v256_v2, %v1972_v5  ;;  %v2002_v23 = vsub.f32 %v255_v6, %v1974_v9  ;;  %v249_v44 = vld [vmem:[%s1951_s9 + $0x20] sm:$0xff]  ;;  %v251_v54 = vld [vmem:[%s1951_s9 + $0x30] sm:$0xff]  ;;  %v252_v55 = vld [vmem:[%s1951_s9 + $0x38] sm:$0xff]  ;;  %s1667_s27 = scalar_lea.vmem %s2239_s30, 1024 }
  0x67   : > { %v1994_v20 = vand.u32 4294901760, %v261_v17  ;;  %1375 = vmatprep.subr.mxu0 %v1970_v4  ;;  %v2006_v24 = vand.u32 4294901760, %v1985_v15  ;;  %v2009_v25 = vand.u32 4294901760, %v1988_v16  ;;  %v267_v26 = vsel %vm259_vm0, %v247_v14, 0  ;;  %p1668_p12 = scmp.ne.s32.totalorder %s2239_s30, %s1667_s27  ;;  %p2308_p1 = scmp.ne.s32.totalorder %s2300_s26, 0 }
  0x68   : > { %v270_v27 = vsel %vm259_vm0, %v248_v19, 0  ;;  %1376 = vmatpush3.msra.mxu0 %v1970_v4  ;;  %v2018_v29 = vsub.f32 %v264_v18, %v1996_v21  ;;  %v2021_v30 = vand.u32 4294901760, %v1999_v22  ;;  %v2024_v31 = vand.u32 4294901760, %v2002_v23  ;;  %s1748_s25 = smov [#allocation8]  }
  0x69   : > { %v2015_v28 = vsub.f32 %v261_v17, %v1994_v20  ;;  %1409 = vmatprep.mubr.f32.mxu1 %v1994_v20  ;;  %1377 = vmatprep.subr.mxu0 %v1972_v5  ;;  %v459_v32 = vsub.f32 %v1985_v15, %v2006_v24  ;;  %v466_v33 = vsub.f32 %v1988_v16, %v2009_v25  ;;  %v2032_v34 = vand.u32 4294901760, %v267_v26  ;;  %p1669_p8 = pnand %p1668_p12, %p2308_p1  ;;  %s1671_s6 = sshll.u32 %s1748_s25, 4  ;;  %s1672_s6 = int_to_ptr.vmem [resolvable:$false] %s1671_s6 }
  0x6a   : > { %v2034_v35 = vand.u32 4294901760, %v270_v27  ;;  %1378 = vmatpush3.msra.mxu0 %v1972_v5  ;;  %v367_v37 = vand.u32 4294901760, %v2018_v29  ;;  %v473_v38 = vsub.f32 %v1999_v22, %v2021_v30  ;;  %v480_v39 = vsub.f32 %v2002_v23, %v2024_v31  ;;  %s1673_s29 = scalar_lea.vmem %s1672_s6, 2048  ;;  %p1674_p5 = scmp.lt.s32.totalorder %s2239_s30, %s1672_s6 }
  0x6b   : > { %v357_v36 = vand.u32 4294901760, %v2015_v28  ;;  %1379 = vmatprep.subr.mxu0 %v1974_v9  ;;  %v460_v40 = vand.u32 4294901760, %v459_v32  ;;  %v467_v41 = vand.u32 4294901760, %v466_v33  ;;  %v2045_v42 = vsub.f32 %v267_v26, %v2032_v34  ;;  %p1670_p10 = pneg %p1669_p8  ;;  %p1675_p2 = scmp.lt.s32.totalorder %s1673_s29, %s1667_s27 }
  0x6c   : > { %v2048_v43 = vsub.f32 %v270_v27, %v2034_v35  ;;  %1380 = vmatpush3.msra.mxu0 %v1974_v9  ;;  %v368_v47 = vsub.f32 %v2018_v29, %v367_v37  ;;  %v474_v48 = vand.u32 4294901760, %v473_v38  ;;  %v481_v49 = vand.u32 4294901760, %v480_v39 }
  0x6d   : > { %v358_v46 = vsub.f32 %v2015_v28, %v357_v36  ;;  %1381 = vmatprep.subr.mxu0 %v1976_v10  ;;  %1397 = vmatprep.subr.mxu1 %v460_v40  ;;  %v377_v50 = vand.u32 4294901760, %v2045_v42  ;;  %v2063_v52 = vsub.f32 %v254_v7, %v1976_v10  ;;  %v2066_v53 = vsub.f32 %v253_v8, %v1978_v11  ;;  %p1676_p3 = por %p1675_p2, %p1674_p5 }
  0x6e   : > { %v387_v51 = vand.u32 4294901760, %v2048_v43  ;;  %1382 = vmatpush3.msra.mxu0 %v1976_v10  ;;  %1398 = vmatpush3.msra.mxu1 %v460_v40  ;;  %v369_v57 = vand.u32 4294901760, %v368_v47  ;;  %v273_v58 = vsel %vm259_vm0, %v249_v44, 0  ;;  %v276_v59 = vsel %vm259_vm0, %v250_v45, 0 }
  0x6f   : > { %v359_v56 = vand.u32 4294901760, %v358_v46  ;;  %1383 = vmatprep.subr.mxu0 %v1978_v11  ;;  %1399 = vmatprep.subr.mxu1 %v467_v41  ;;  %v378_v60 = vsub.f32 %v2045_v42, %v377_v50  ;;  %v2081_v62 = vand.u32 4294901760, %v2063_v52  ;;  %v2084_v63 = vand.u32 4294901760, %v2066_v53  ;;  %p1677_p9 = pnand %p1676_p3, %p1670_p10 }
  0x70   : > { %v388_v61 = vsub.f32 %v2048_v43, %v387_v51  ;;  %1384 = vmatpush3.msra.mxu0 %v1978_v11  ;;  %v2087_v0 = vand.u32 4294901760, %v273_v58  ;;  %v2089_v1 = vand.u32 4294901760, %v276_v59  ;;  %v279_v2 = vsel %vm259_vm0, %v251_v54, 0  ;;  %1400 = vmatpush3.msra.mxu1 %v467_v41 }
  0x71   : > { %1385 = vmatprep.mubr.f32.mxu0 %v359_v56  ;;  %v282_v6 = vsel %vm259_vm0, %v252_v55, 0  ;;  %v379_v7 = vand.u32 4294901760, %v378_v60  ;;  %v487_v12 = vsub.f32 %v2063_v52, %v2081_v62  ;;  %v494_v13 = vsub.f32 %v2066_v53, %v2084_v63  ;;  %1401 = vmatprep.subr.mxu1 %v474_v48 }
  0x72   : > { %1386 = vmatmul.mubr.f32.vlgmr.msra.gmra.mxu0 %v369_v57  ;;  %v389_v8 = vand.u32 4294901760, %v388_v61  ;;  %1421 = vmatprep.subr.mxu0 %v1985_v15  ;;  %v2099_v14 = vsub.f32 %v273_v58, %v2087_v0  ;;  %v2102_v17 = vsub.f32 %v276_v59, %v2089_v1  ;;  %v2104_v18 = vand.u32 4294901760, %v279_v2 }
  0x73   : > { %v2106_v19 = vand.u32 4294901760, %v282_v6  ;;  %1402 = vmatpush3.msra.mxu1 %v474_v48  ;;  %1388 = vmatprep.mubr.f32.mxu0 %v379_v7  ;;  %v488_v26 = vand.u32 4294901760, %v487_v12  ;;  %v495_v27 = vand.u32 4294901760, %v494_v13 }
  0x74   : > { %1403 = vmatprep.subr.mxu1 %v481_v49  ;;  %1422 = vmatpush3.msra.mxu0 %v1985_v15  ;;  %v397_v32 = vand.u32 4294901760, %v2099_v14  ;;  %v407_v33 = vand.u32 4294901760, %v2102_v17  ;;  %v2112_v38 = vsub.f32 %v279_v2, %v2104_v18 }
  0x75   : > { %v2115_v39 = vsub.f32 %v282_v6, %v2106_v19  ;;  %1404 = vmatpush3.msra.mxu1 %v481_v49  ;;  %1423 = vmatprep.subr.mxu0 %v1988_v16 }
  0x76   : > { %1389 = vmatmul.mubr.f32.gmra.mxu0 %v389_v8  ;;  %1405 = vmatprep.subr.mxu1 %v488_v26  ;;  %v398_v40 = vsub.f32 %v2099_v14, %v397_v32  ;;  %v408_v15 = vsub.f32 %v2102_v17, %v407_v33  ;;  %v417_v41 = vand.u32 4294901760, %v2112_v38 }
  0x77   : > { %v427_v44 = vand.u32 4294901760, %v2115_v39  ;;  %1406 = vmatpush3.msra.mxu1 %v488_v26  ;;  %1424 = vmatpush3.msra.mxu0 %v1988_v16 }
  0x78   : > { %1407 = vmatprep.subr.mxu1 %v495_v27  ;;  %v399_v45 = vand.u32 4294901760, %v398_v40  ;;  %v409_v46 = vand.u32 4294901760, %v408_v15  ;;  %1425 = vmatprep.subr.mxu0 %v1999_v22  ;;  %v418_v47 = vsub.f32 %v2112_v38, %v417_v41 }
  0x79   : > { %v428_v48 = vsub.f32 %v2115_v39, %v427_v44  ;;  %1408 = vmatpush3.msra.mxu1 %v495_v27  ;;  %1426 = vmatpush3.msra.mxu0 %v1999_v22  ;;  %v1274_v27 = vld [vmem:[%s1962_s22] ss:$0 sm:$0xff] }
  0x7a   : > { %1391 = vmatprep.mubr.f32.mxu0 %v399_v45  ;;  %1410 = vmatmul.mubr.f32.vlgmr.msra.gmra.mxu1 %v1996_v21  ;;  %v419_v16 = vand.u32 4294901760, %v418_v47 }
  0x7b   : > { %1392 = vmatmul.mubr.f32.gmra.mxu0 %v409_v46  ;;  %1445 = vmatprep.subr.mxu1 %v1968_v3  ;;  %v429_v49 = vand.u32 4294901760, %v428_v48 }
  0x7c   : > { %1446 = vmatpush3.msra.mxu1 %v1968_v3  ;;  %1427 = vmatprep.subr.mxu0 %v2002_v23 }
  0x7d   : > { %1394 = vmatprep.mubr.f32.mxu0 %v419_v16  ;;  %1412 = vmatprep.mubr.f32.mxu1 %v2032_v34 }
  0x7e   : > { %1428 = vmatpush3.msra.mxu0 %v2002_v23  ;;  %1447 = vmatprep.subr.mxu1 %v1970_v4 }
  0x7f   : > { %1395 = vmatmul.mubr.f32.gmra.mxu0 %v429_v49  ;;  %1413 = vmatmul.mubr.f32.gmra.mxu1 %v2034_v35 }
  0x80   : > { %1429 = vmatprep.subr.mxu0 %v2063_v52  ;;  %1448 = vmatpush3.msra.mxu1 %v1970_v4 }
  0x81   : > { %1430 = vmatpush3.msra.mxu0 %v2063_v52  ;;  %1449 = vmatprep.subr.mxu1 %v1972_v5 }
  0x82   : > { %1431 = vmatprep.subr.mxu0 %v2066_v53  ;;  %1415 = vmatprep.mubr.f32.mxu1 %v2087_v0 }
  0x83   : > { %1432 = vmatpush3.msra.mxu0 %v2066_v53  ;;  %1433 = vmatprep.mubr.f32.mxu0 %v2015_v28 }
  0x84   : > { %1450 = vmatpush3.msra.mxu1 %v1972_v5  ;;  %1434 = vmatmul.mubr.f32.vlgmr.msra.gmra.mxu0 %v2018_v29 }
  0x85   : > { %1416 = vmatmul.mubr.f32.gmra.mxu1 %v2089_v1  ;;  %1451 = vmatprep.subr.mxu1 %v1974_v9 }
  0x86   : > { %1452 = vmatpush3.msra.mxu1 %v1974_v9  ;;  %1418 = vmatprep.mubr.f32.mxu1 %v2104_v18 }
  0x87   : > { %1436 = vmatprep.mubr.f32.mxu0 %v2045_v42  ;;  %1453 = vmatprep.subr.mxu1 %v1976_v10 }
  0x88   : > { %1437 = vmatmul.mubr.f32.gmra.mxu0 %v2048_v43  ;;  %1454 = vmatpush3.msra.mxu1 %v1976_v10 }
  0x89   : > { %1419 = vmatmul.mubr.f32.gmra.mxu1 %v2106_v19  ;;  %1469 = vmatprep.subr.mxu0 %v2006_v24 }
  0x8a   : > { %1470 = vmatpush3.msra.mxu0 %v2006_v24  ;;  %1455 = vmatprep.subr.mxu1 %v1978_v11 }
  0x8b   : > { %1471 = vmatprep.subr.mxu0 %v2009_v25  ;;  %1439 = vmatprep.mubr.f32.mxu0 %v2099_v14 }
  0x8c   : > { %1456 = vmatpush3.msra.mxu1 %v1978_v11  ;;  %1457 = vmatprep.mubr.f32.mxu1 %v357_v36 }
  0x8d   : > { %1472 = vmatpush3.msra.mxu0 %v2009_v25  ;;  %1458 = vmatmul.mubr.f32.vlgmr.msra.gmra.mxu1 %v367_v37 }
  0x8e   : > { %1440 = vmatmul.mubr.f32.gmra.mxu0 %v2102_v17  ;;  %1473 = vmatprep.subr.mxu0 %v2021_v30 }
  0x8f   : > { %1493 = vmatprep.subr.mxu1 %v1968_v3  ;;  %1474 = vmatpush3.msra.mxu0 %v2021_v30 }
  0x90   : > { %1494 = vmatpush3.msra.mxu1 %v1968_v3  ;;  %1475 = vmatprep.subr.mxu0 %v2024_v31 }
  0x91   : > { %1442 = vmatprep.mubr.f32.mxu0 %v2112_v38  ;;  %1460 = vmatprep.mubr.f32.mxu1 %v377_v50 }
  0x92   : > { %1476 = vmatpush3.msra.mxu0 %v2024_v31  ;;  %1495 = vmatprep.subr.mxu1 %v1970_v4 }
  0x93   : > { %1443 = vmatmul.mubr.f32.gmra.mxu0 %v2115_v39  ;;  %1461 = vmatmul.mubr.f32.gmra.mxu1 %v387_v51 }
  0x94   : > { %1477 = vmatprep.subr.mxu0 %v2081_v62  ;;  %1496 = vmatpush3.msra.mxu1 %v1970_v4 }
  0x95   : > { %1478 = vmatpush3.msra.mxu0 %v2081_v62  ;;  %1497 = vmatprep.subr.mxu1 %v1972_v5 }
  0x96   : > { %1479 = vmatprep.subr.mxu0 %v2084_v63  ;;  %1463 = vmatprep.mubr.f32.mxu1 %v397_v32 }
  0x97   : > { %1480 = vmatpush3.msra.mxu0 %v2084_v63  ;;  %1481 = vmatprep.mubr.f32.mxu0 %v1994_v20 }
  0x98   : > { %1498 = vmatpush3.msra.mxu1 %v1972_v5  ;;  %1482 = vmatmul.mubr.f32.vlgmr.msra.gmra.mxu0 %v1996_v21 }
  0x99   : > { %1464 = vmatmul.mubr.f32.gmra.mxu1 %v407_v33  ;;  %1499 = vmatprep.subr.mxu1 %v1974_v9 }
  0x9a   : > { %1500 = vmatpush3.msra.mxu1 %v1974_v9  ;;  %1466 = vmatprep.mubr.f32.mxu1 %v417_v41 }
  0x9b   : > { %1484 = vmatprep.mubr.f32.mxu0 %v2032_v34  ;;  %1501 = vmatprep.subr.mxu1 %v1976_v10 }
  0x9c   : > { %1485 = vmatmul.mubr.f32.gmra.mxu0 %v2034_v35  ;;  %1502 = vmatpush3.msra.mxu1 %v1976_v10 }
  0x9d   : > { %1467 = vmatmul.mubr.f32.gmra.mxu1 %v427_v44  ;;  %1503 = vmatprep.subr.mxu1 %v1978_v11 }
  0x9e   : > { %1487 = vmatprep.mubr.f32.mxu0 %v2087_v0  ;;  %1504 = vmatpush3.msra.mxu1 %v1978_v11 }
  0x9f   : > { %1505 = vmatprep.mubr.f32.mxu1 %v1994_v20 }
  0xa0   : > { %1488 = vmatmul.mubr.f32.gmra.mxu0 %v2089_v1 }
  0xa1   : > { %1506 = vmatmul.mubr.f32.vlgmr.msra.gmra.mxu1 %v1996_v21  ;;  %1490 = vmatprep.mubr.f32.mxu0 %v2104_v18 }
  0xa2   : > { %1508 = vmatprep.mubr.f32.mxu1 %v2032_v34 }
  0xa4   : > { %1491 = vmatmul.mubr.f32.gmra.mxu0 %v2106_v19 }
  0xa5   : > { %1509 = vmatmul.mubr.f32.gmra.mxu1 %v2034_v35 }
  0xa6   : > { %1511 = vmatprep.mubr.f32.mxu1 %v2087_v0 }
  0xa9   : > { %1512 = vmatmul.mubr.f32.gmra.mxu1 %v2089_v1 }
  0xaa   : > { %1514 = vmatprep.mubr.f32.mxu1 %v2104_v18 }
  0xad   : > { %1515 = vmatmul.mubr.f32.gmra.mxu1 %v2106_v19 }
 0x132   : > { %v1387_v3 = vpop.f32.mrf.mxu0 }
 0x134   : > { %v361_v4 = vpop.f32.mrf.mxu0 }
 0x136   : > { %v1390_v5 = vpop.f32.mrf.mxu0 }
 0x138   : > { %v381_v9 = vpop.f32.mrf.mxu0 }
 0x13a   : > { %v1411_v10 = vpop.f32.mrf.mxu1 }
 0x13b   : > { %v1393_v11 = vpop.f32.mrf.mxu0  ;;  %v539_v58 = vadd.f32 %v1411_v10, %v1387_v3 }
 0x13c   : > { %v532_v20 = vpop.f32.mrf.mxu1 }
 0x13d   : > { %v401_v21 = vpop.f32.mrf.mxu0  ;;  %v533_v61 = vadd.f32 %v532_v20, %v361_v4  ;;  %v1275_v4 = vld [vmem:[%s1962_s22 + $0x1] ss:$0 sm:$0xff] }
 0x13f   : > { %v1396_v22 = vpop.f32.mrf.mxu0  ;;  %v1414_v23 = vpop.f32.mrf.mxu1 }
 0x140   : > { %v551_v1 = vadd.f32 %v1414_v23, %v1390_v5 }
 0x141   : > { %v421_v24 = vpop.f32.mrf.mxu0  ;;  %v544_v25 = vpop.f32.mrf.mxu1 }
 0x142   : > { %v545_v12 = vadd.f32 %v544_v25, %v381_v9 }
 0x144   : > { %v1435_v28 = vpop.f32.mrf.mxu0 }
 0x145   : > { %v1417_v29 = vpop.f32.mrf.mxu1  ;;  %v666_v62 = vadd.f32 %v1435_v28, %v539_v58 }
 0x146   : > { %v658_v30 = vpop.f32.mrf.mxu0  ;;  %v563_v19 = vadd.f32 %v1417_v29, %v1393_v11 }
 0x147   : > { %v556_v31 = vpop.f32.mrf.mxu1  ;;  %v659_v2 = vadd.f32 %v658_v30, %v533_v61 }
 0x148   : > { %v1438_v34 = vpop.f32.mrf.mxu0  ;;  %v557_v40 = vadd.f32 %v556_v31, %v401_v21 }
 0x149   : > { %v1420_v35 = vpop.f32.mrf.mxu1  ;;  %v680_v13 = vadd.f32 %v1438_v34, %v551_v1 }
 0x14a   : > { %v672_v36 = vpop.f32.mrf.mxu0  ;;  %v575_v16 = vadd.f32 %v1420_v35, %v1396_v22  ;;  %v1276_v35 = vld [vmem:[%s1962_s22 + $0x2] ss:$0 sm:$0xff] }
 0x14b   : > { %v568_v37 = vpop.f32.mrf.mxu1  ;;  %v673_v32 = vadd.f32 %v672_v36, %v545_v12 }
 0x14c   : > { %v569_v20 = vadd.f32 %v568_v37, %v421_v24 }
 0x14d   : > { %v1459_v42 = vpop.f32.mrf.mxu1 }
 0x14e   : > { %v1441_v43 = vpop.f32.mrf.mxu0  ;;  %v795_v6 = vadd.f32 %v1459_v42, %v666_v62 }
 0x14f   : > { %v786_v50 = vpop.f32.mrf.mxu1  ;;  %v694_v15 = vadd.f32 %v1441_v43, %v563_v19 }
 0x150   : > { %v686_v51 = vpop.f32.mrf.mxu0  ;;  %v787_v14 = vadd.f32 %v786_v50, %v659_v2 }
 0x151   : > { %v687_v49 = vadd.f32 %v686_v51, %v557_v40 }
 0x153   : > { %v1444_v52 = vpop.f32.mrf.mxu0  ;;  %v1462_v53 = vpop.f32.mrf.mxu1 }
 0x154   : > { %v811_v33 = vadd.f32 %v1462_v53, %v680_v13  ;;  %v708_v21 = vadd.f32 %v1444_v52, %v575_v16 }
 0x155   : > { %v700_v54 = vpop.f32.mrf.mxu0  ;;  %v802_v55 = vpop.f32.mrf.mxu1 }
 0x156   : > { %v803_v45 = vadd.f32 %v802_v55, %v673_v32  ;;  %v701_v31 = vadd.f32 %v700_v54, %v569_v20 }
 0x158   : > { %v1483_v56 = vpop.f32.mrf.mxu0 }
 0x159   : > { %v1465_v57 = vpop.f32.mrf.mxu1  ;;  %v938_v17 = vadd.f32 %v1483_v56, %v795_v6  ;;  %v1277_v56 = vld [vmem:[%s1962_s22 + $0x3] ss:$0 sm:$0xff] }
 0x15a   : > { %v931_v59 = vpop.f32.mrf.mxu0  ;;  %v827_v5 = vadd.f32 %v1465_v57, %v694_v15 }
 0x15b   : > { %v818_v60 = vpop.f32.mrf.mxu1  ;;  %v932_v38 = vadd.f32 %v931_v59, %v787_v14 }
 0x15c   : > { %v1486_v63 = vpop.f32.mrf.mxu0  ;;  %v819_v22 = vadd.f32 %v818_v60, %v687_v49 }
 0x15d   : > { %v1468_v0 = vpop.f32.mrf.mxu1  ;;  %v950_v46 = vadd.f32 %v1486_v63, %v811_v33 }
 0x15e   : > { %v943_v7 = vpop.f32.mrf.mxu0  ;;  %v843_v36 = vadd.f32 %v1468_v0, %v708_v21 }
 0x15f   : > { %v834_v8 = vpop.f32.mrf.mxu1  ;;  %v944_v9 = vadd.f32 %v943_v7, %v803_v45 }
 0x160   : > { %v1489_v18 = vpop.f32.mrf.mxu0  ;;  %v835_v51 = vadd.f32 %v834_v8, %v701_v31 }
 0x161   : > { %v1507_v26 = vpop.f32.mrf.mxu1  ;;  %v962_v28 = vadd.f32 %v1489_v18, %v827_v5 }
 0x162   : > { %v1057_v39 = vadd.f32 %v1507_v26, %v938_v17  ;;  %v955_v41 = vpop.f32.mrf.mxu0 }
 0x163   : > { %v1050_v44 = vpop.f32.mrf.mxu1  ;;  %v956_v42 = vadd.f32 %v955_v41, %v819_v22 }
 0x164   : > { %v1125_v47 = vadd.f32 %v1274_v27, %v1057_v39  ;;  %v1051_v48 = vadd.f32 %v1050_v44, %v932_v38  ;;  %v1492_v23 = vpop.f32.mrf.mxu0 }
 0x165   : > { %v1510_v3 = vpop.f32.mrf.mxu1  ;;  %v974_v52 = vadd.f32 %v1492_v23, %v843_v36 }
 0x166   : > { %1133 = vst [vmem:[%s2228_s5 + $0x8] sm:$0xff] %v1125_v47  ;;  %v1124_v10 = vadd.f32 %v1274_v27, %v1051_v48  ;;  %v1069_v11 = vadd.f32 %v1510_v3, %v950_v46  ;;  %v967_v37 = vpop.f32.mrf.mxu0 }
 0x167   : > { %v1062_v25 = vpop.f32.mrf.mxu1  ;;  %v968_v57 = vadd.f32 %v967_v37, %v835_v51 }
 0x168   : > { %1132 = vst [vmem:[%s2228_s5] sm:$0xff] %v1124_v10  ;;  %v1127_v29 = vadd.f32 %v1275_v4, %v1069_v11  ;;  %v1063_v30 = vadd.f32 %v1062_v25, %v944_v9 }
 0x169   : > { %v1513_v34 = vpop.f32.mrf.mxu1 }
 0x16a   : > { %1135 = vst [vmem:[%s2228_s5 + $0x18] sm:$0xff] %v1127_v29  ;;  %v1126_v43 = vadd.f32 %v1275_v4, %v1063_v30  ;;  %v1081_v24 = vadd.f32 %v1513_v34, %v962_v28 }
 0x16b   : > { %v1074_v50 = vpop.f32.mrf.mxu1 }
 0x16c   : > { %1134 = vst [vmem:[%s2228_s5 + $0x10] sm:$0xff] %v1126_v43  ;;  %v1129_v53 = vadd.f32 %v1276_v35, %v1081_v24  ;;  %v1075_v55 = vadd.f32 %v1074_v50, %v956_v42 }
 0x16d   : > { %v1516_v54 = vpop.f32.mrf.mxu1 }
 0x16e   : > { %1137 = vst [vmem:[%s2228_s5 + $0x28] sm:$0xff] %v1129_v53  ;;  %v1128_v58 = vadd.f32 %v1276_v35, %v1075_v55  ;;  %v1093_v59 = vadd.f32 %v1516_v54, %v974_v52 }
 0x16f   : > { %v1086_v60 = vpop.f32.mrf.mxu1 }
 0x170   : > { %1136 = vst [vmem:[%s2228_s5 + $0x20] sm:$0xff] %v1128_v58  ;;  %v1131_v61 = vadd.f32 %v1277_v56, %v1093_v59  ;;  %v1087_v62 = vadd.f32 %v1086_v60, %v968_v57 }
 0x172   : > { %1139 = vst [vmem:[%s2228_s5 + $0x38] sm:$0xff] %v1131_v61  ;;  %v1130_v63 = vadd.f32 %v1277_v56, %v1087_v62 }
 0x174   : > { %1138 = vst [vmem:[%s2228_s5 + $0x30] sm:$0xff] %v1130_v63 }
 0x175   : > { %1680 = shalt.err (!%p1677_p9)
}
 0x176   : > { %s1681_s4 = scalar_lea.hbm %s2245_s23, 1024  ;;  %s1685_s8 = scalar_lea.hbm %s2293_s3, 2048 }
 0x177   : > { %p1682_p13 = scmp.ne.s32.totalorder %s2245_s23, %s1681_s4  ;;  %p1686_p0 = scmp.lt.s32.totalorder %s2245_s23, %s2293_s3 }
 0x178   : > { %p1687_p11 = scmp.lt.s32.totalorder %s1685_s8, %s1681_s4 }
 0x179   : > { %p1683_p7 = pnand %p1682_p13, %p2308_p1 }
 0x17a   : > { %p1688_p4 = por %p1687_p11, %p1686_p0 }
 0x17b   : > { %p1684_p6 = pneg %p1683_p7 }
 0x17d   : > { %p1689_p12 = pnand %p1688_p4, %p1684_p6 }
 0x17f   : > { %1692 = shalt.err (!%p1689_p12)
}
 0x180   : > { %s1749_s22 = smov 128   ;;  %s1750_s5 = smov 8  }
 0x181   : > { %1525 = dma.vmem_to_hbm [thread:$0]  (%p2308_p1), %s2239_s30, 1024, %s2245_s23, %s1141_s18, %s1749_s22, %s1749_s22, %s1750_s5  }
 0x182 PF: > { %s1170_s7 = sand.u32 1, %s1727_s12   ;;  %p2309_p8 = scmp.ne.s32.totalorder %s2301_s28, 0 }
 0x183   : > { %p2310_p10 = scmp.ge.s32.totalorder %s1739_s15, 2  ;;  %s1171_s10 = scalar_lea.sflag [#allocation4], %s1170_s7 }
 0x185   : > { %p1539_p5 = pnand %p2310_p10, %p2309_p8 }
 0x187   : > { %p1540_p2 = pneg %p1539_p5 }
 0x189   : > { %1722 = dma.done.wait (%p1540_p2), %s1171_s10, 1024  }
 0x18a   : > { %1724 = vsyncadd (%p1540_p2), %s1171_s10, 4294966272  ;;  %p17_p3 = scmp.ge.s32.totalorder %s1792_s16, 4   ;;  %s2311_s12 = smov %s1731_s13 }
 0x18b   : > { %s2312_s13 = smov %s1735_s14  ;;  %s2313_s14 = smov %s1801_s19 }
 0x18c   : > { %s2314_s15 = smov %s1792_s16  ;;  %19 = sbr.rel (!%p17_p3) target bundleno = 6 (0x6), region = 92 }
 0x191   :  { %1176 = vsyncpa [#allocation3], 1 }
 0x192   :  { %1178 = vsyncpa [#allocation3 + $0x1], 1 }
 0x193   :  { %1179 = vsyncpa [#allocation6], 1 }
 0x194   :  { %1180 = vsyncpa [#allocation4], 1 }
 0x195   :  { %1182 = vsyncpa [#allocation4 + $0x1], 1 }

</bundles_post_ra>
